<compile_context>
chip_gen: v6e
topology: v6e:2x2x1
jax: 0.10.0
libtpu: 0.0.40
codegen_flags: <defaults>
</compile_context>

<pallas_src>
import math

import jax
import jax.numpy as jnp
from jax.experimental import pallas as pl
from jax.experimental.pallas import tpu as pltpu


def _round_up(x: int, m: int) -> int:
    return ((x + m - 1) // m) * m


def _vmem_budgets():
    """Returns (tile_footprint_budget_bytes, vmem_limit_bytes), generation-aware.

    v2-v6 TensorCores have 128 MiB of VMEM; anything unrecognized (v7x-class,
    64 MiB per core) gets the conservative setting so a v6e-tuned config never
    fails on v7x.
    """
    try:
        kind = jax.devices()[0].device_kind.lower()
    except Exception:  # pragma: no cover - defensive
        kind = ""
    big_vmem = any(tag in kind for tag in ("v2", "v3", "v4", "v5", "v6"))
    if big_vmem:
        return 48 * 1024 * 1024, 96 * 1024 * 1024
    return 24 * 1024 * 1024, 44 * 1024 * 1024


# ----------------------------- kernels --------------------------------------


def _mlp_kernel_wresident(h_ref, w_ref, b_ref, o_ref):
    """Weight-resident path: one full-K matmul per M tile, bias fused."""
    acc = jnp.dot(
        h_ref[...].astype(jnp.bfloat16),  # in-kernel cast, hidden under the MXU
        w_ref[...],
        preferred_element_type=jnp.float32,
    )
    o_ref[...] = (acc + b_ref[...]).astype(o_ref.dtype)


def _mlp_kernel_kgrid_f32out(h_ref, w_ref, b_ref, o_ref):
    """K-gridded path, f32 output: accumulate directly into the resident o block."""
    k = pl.program_id(2)

    @pl.when(k == 0)
    def _():
        o_ref[...] = jnp.broadcast_to(b_ref[...], o_ref.shape)

    o_ref[...] += jnp.dot(
        h_ref[...].astype(jnp.bfloat16),
        w_ref[...],
        preferred_element_type=jnp.float32,
    )


def _mlp_kernel_kgrid_acc(h_ref, w_ref, b_ref, o_ref, acc_ref):
    """K-gridded path, non-f32 output: f32 scratch accumulator, single cast."""
    k = pl.program_id(2)

    @pl.when(k == 0)
    def _():
        acc_ref[...] = jnp.broadcast_to(b_ref[...], acc_ref.shape)

    acc_ref[...] += jnp.dot(
        h_ref[...].astype(jnp.bfloat16),
        w_ref[...],
        preferred_element_type=jnp.float32,
    )

    @pl.when(k == pl.num_programs(2) - 1)
    def _():
        o_ref[...] = acc_ref[...].astype(o_ref.dtype)


# ----------------------------- wrapper ---------------------------------------


def mlp_layer(adj, h, weight_t, bias, *, force_k_grid: bool = False):
    """Pallas equivalent of MLPLayer.forward(adj, h).

    Args:
      adj:      unused (the PyTorch layer ignores it; kept for signature parity).
      h:        [M, input_dim] activations.
      weight_t: [input_dim, output_dim]  (== PyTorch weight.T).
      bias:     [output_dim].
      force_k_grid: force the (M, N, K) tiled fallback (testing / huge weights).

    Returns:
      [M, output_dim] in h.dtype.  Compute uses bf16 MXU operands with f32
      accumulation (matches `_reference` numerics, ~1e-3 rel tolerance vs fp32).
    """
    del adj  # MLPLayer ignores the adjacency matrix.

    m, k_dim = h.shape
    assert weight_t.shape[0] == k_dim, "weight_t must be [input_dim, output_dim]"
    n_dim = weight_t.shape[1]
    out_dtype = h.dtype
    h_item = jnp.dtype(h.dtype).itemsize
    out_item = jnp.dtype(out_dtype).itemsize

    tile_budget, vmem_limit = _vmem_budgets()

    # Lane-dense output: pad N (parameter side) to a multiple of 128.
    n_pad = _round_up(n_dim, 128)
    # bf16 output tiles pack 16 sublanes per vreg (matters on v5e's single vst).
    sub = 16 if out_dtype == jnp.bfloat16 else 8

    # ------------------ Path A: weight resident in VMEM ---------------------
    tm_a = None
    if not force_k_grid:
        # Double-buffered allocation estimate for the (constant-index) weight +
        # bias; DMA actually happens only once since the block index never moves.
        w_fp = 2 * k_dim * n_pad * 2 + 2 * n_pad * 4
        if w_fp <= 0.6 * tile_budget:
            for cand in (c for c in (512, 256, 128, 64, 32, 16, 8) if c % sub == 0):
                tm = min(cand, _round_up(m, sub))
                fp = w_fp + 2 * tm * k_dim * h_item + 2 * tm * n_pad * out_item
                if fp <= tile_budget:
                    tm_a = tm
                    break

    if tm_a is not None:
        m_pad = _round_up(m, tm_a)
        # Pad only when the shape is not already tile-aligned (K never padded:
        # the h/W blocks use the full K dimension).
        h_p = h if m_pad == m else jnp.pad(h, ((0, m_pad - m), (0, 0)))
        w_p = weight_t.astype(jnp.bfloat16)  # one-time parameter prep
        b_p = bias.astype(jnp.float32)
        if n_pad != n_dim:
            w_p = jnp.pad(w_p, ((0, 0), (0, n_pad - n_dim)))
            b_p = jnp.pad(b_p, (0, n_pad - n_dim))
        b2d = b_p.reshape(1, n_pad)

        cost = pl.CostEstimate(
            flops=2 * m_pad * k_dim * n_pad,
            transcendentals=0,
            bytes_accessed=(
                m_pad * k_dim * h_item      # h: exactly one HBM pass
                + k_dim * n_pad * 2         # W: DMA'd once (bf16)
                + n_pad * 4                 # bias
                + m_pad * n_pad * out_item  # output: one pass
            ),
        )

        out = pl.pallas_call(
            _mlp_kernel_wresident,
            out_shape=jax.ShapeDtypeStruct((m_pad, n_pad), out_dtype),
            grid_spec=pltpu.PrefetchScalarGridSpec(
                num_scalar_prefetch=0,
                grid=(m_pad // tm_a,),
                in_specs=[
                    pl.BlockSpec((tm_a, k_dim), lambda i: (i, 0)),   # h tile
                    pl.BlockSpec((k_dim, n_pad), lambda i: (0, 0)),  # W resident
                    pl.BlockSpec((1, n_pad), lambda i: (0, 0)),      # bias
                ],
                out_specs=pl.BlockSpec((tm_a, n_pad), lambda i: (i, 0)),
            ),
            compiler_params=pltpu.CompilerParams(
                dimension_semantics=("parallel",),   # megacore-shards M on v7x
                vmem_limit_bytes=vmem_limit,
            ),
            cost_estimate=cost,
        )(h_p, w_p, b2d)

        if (m_pad, n_pad) != (m, n_dim):
            out = out[:m, :n_dim]
        return out

    # --------------- Path B: (M, N, K) grid, resident accumulator -----------
    tn_cap = 1024 if tile_budget >= 40 * 1024 * 1024 else 512
    tm = min(512, _round_up(m, sub))
    tn = min(tn_cap, n_pad)                      # collapse N when it fits one tile
    tk = min(1024, _round_up(k_dim, 128))

    m_pad = _round_up(m, tm)
    n_pad2 = _round_up(n_pad, tn)
    k_pad = _round_up(k_dim, tk)
    m_blocks, n_blocks, k_blocks = m_pad // tm, n_pad2 // tn, k_pad // tk

    h_p = h
    if (m_pad, k_pad) != (m, k_dim):
        h_p = jnp.pad(h, ((0, m_pad - m), (0, k_pad - k_dim)))
    if n_blocks > 1:
        # h gets re-streamed across N blocks -> ship it to HBM as bf16 once.
        h_p = h_p.astype(jnp.bfloat16)
    h_item_eff = jnp.dtype(h_p.dtype).itemsize

    w_p = weight_t.astype(jnp.bfloat16)
    b_p = bias.astype(jnp.float32)
    if (k_pad, n_pad2) != (k_dim, n_dim):
        w_p = jnp.pad(w_p, ((0, k_pad - k_dim), (0, n_pad2 - n_dim)))
    if n_pad2 != n_dim:
        b_p = jnp.pad(b_p, (0, n_pad2 - n_dim))
    b2d = b_p.reshape(1, n_pad2)

    cost = pl.CostEstimate(
        flops=2 * m_pad * k_pad * n_pad2,
        transcendentals=0,
        bytes_accessed=(
            m_pad * k_pad * h_item_eff * n_blocks     # h re-read per N block
            + k_pad * n_pad2 * 2 * m_blocks           # W re-read per M block
            + n_pad2 * 4 * m_blocks * n_blocks        # bias
            + m_pad * n_pad2 * out_item               # output written once
        ),
    )

    if out_dtype == jnp.float32:
        kernel = _mlp_kernel_kgrid_f32out          # accumulate into o_ref
        scratch = []
    else:
        kernel = _mlp_kernel_kgrid_acc             # f32 scratch accumulator
        scratch = [pltpu.VMEM((tm, tn), jnp.float32)]

    out = pl.pallas_call(
        kernel,
        out_shape=jax.ShapeDtypeStruct((m_pad, n_pad2), out_dtype),
        grid_spec=pltpu.PrefetchScalarGridSpec(
            num_scalar_prefetch=0,
            grid=(m_blocks, n_blocks, k_blocks),
            in_specs=[
                pl.BlockSpec((tm, tk), lambda i, j, k: (i, k)),   # h tile
                pl.BlockSpec((tk, tn), lambda i, j, k: (k, j)),   # W tile
                pl.BlockSpec((1, tn), lambda i, j, k: (0, j)),    # bias tile
            ],
            out_specs=pl.BlockSpec((tm, tn), lambda i, j, k: (i, j)),
            scratch_shapes=scratch,
        ),
        compiler_params=pltpu.CompilerParams(
            dimension_semantics=("parallel", "parallel", "arbitrary"),
            vmem_limit_bytes=vmem_limit,
        ),
        cost_estimate=cost,
    )(h_p, w_p, b2d)

    if (m_pad, n_pad2) != (m, n_dim):
        out = out[:m, :n_dim]
    return out


# ----------------------------- helpers / demo --------------------------------


def init_mlp_params(key, input_dim, output_dim, dtype=jnp.float32):
    """Deterministic init mirroring nn.Linear defaults (Kaiming-uniform-ish)."""
    k_w, k_b = jax.random.split(key)
    bound = 1.0 / math.sqrt(input_dim)
    # PyTorch stores weight as [output_dim, input_dim]; keep it transposed
    # ([input_dim, output_dim]) for the kernel's h @ W layout.
    weight_t = jax.random.uniform(
        k_w, (input_dim, output_dim), dtype=dtype, minval=-bound, maxval=bound
    )
    bias = jax.random.uniform(
        k_b, (output_dim,), dtype=dtype, minval=-bound, maxval=bound
    )
    return weight_t, bias


def _reference(h, weight_t, bias):
    # Matches the kernel's bf16-operand / f32-accumulate numerics.
    hq = h.astype(jnp.bfloat16).astype(jnp.float32)
    wq = weight_t.astype(jnp.bfloat16).astype(jnp.float32)
    out = jnp.dot(hq, wq, precision=jax.lax.Precision.HIGHEST) + bias.astype(
        jnp.float32
    )
    return out.astype(h.dtype)


if __name__ == "__main__":
    key = jax.random.PRNGKey(0)
    keys = jax.random.split(key, 8)

    # 1) Tiny module-like shapes (weight-resident path, single M tile).
    num_nodes, input_dim, output_dim = 8, 32, 16
    h1 = jax.random.normal(keys[0], (num_nodes, input_dim), dtype=jnp.float32)
    adj1 = jax.random.normal(keys[1], (num_nodes, num_nodes), dtype=jnp.float32)
    w1, b1 = init_mlp_params(keys[2], input_dim, output_dim)
    out1 = jax.block_until_ready(mlp_layer(adj1, h1, w1, b1))
    assert out1.shape == (num_nodes, output_dim)
    assert jnp.allclose(out1, _reference(h1, w1, b1), atol=1e-3, rtol=1e-3)

    # 2) Unaligned shapes (M pad + lane-dense N pad, still weight-resident).
    m2, k2, n2 = 300, 640, 200
    h2 = jax.random.normal(keys[3], (m2, k2), dtype=jnp.float32)
    w2, b2 = init_mlp_params(keys[4], k2, n2)
    adj2 = jnp.zeros((m2, m2), dtype=jnp.float32)
    out2 = jax.block_until_ready(mlp_layer(adj2, h2, w2, b2))
    assert out2.shape == (m2, n2)
    assert jnp.allclose(out2, _reference(h2, w2, b2), atol=2e-3, rtol=2e-3)

    # 3) Force the K-gridded fallback (f32: accumulate directly into o_ref).
    m3, k3, n3 = 256, 2048, 384
    h3 = jax.random.normal(keys[5], (m3, k3), dtype=jnp.float32)
    w3, b3 = init_mlp_params(keys[6], k3, n3)
    adj3 = jnp.zeros((1, 1), dtype=jnp.float32)
    out3 = jax.block_until_ready(mlp_layer(adj3, h3, w3, b3, force_k_grid=True))
    assert out3.shape == (m3, n3)
    assert jnp.allclose(out3, _reference(h3, w3, b3), atol=5e-3, rtol=5e-3)

    # 4) Force the K-gridded fallback with bf16 activations (scratch variant).
    m4, k4, n4 = 128, 512, 256
    h4 = jax.random.normal(keys[7], (m4, k4), dtype=jnp.bfloat16)
    w4, b4 = init_mlp_params(keys[2], k4, n4)
    adj4 = jnp.zeros((1, 1), dtype=jnp.float32)
    out4 = jax.block_until_ready(mlp_layer(adj4, h4, w4, b4, force_k_grid=True))
    assert out4.shape == (m4, n4)
    ref4 = _reference(h4, w4, b4)
    assert jnp.allclose(
        out4.astype(jnp.float32), ref4.astype(jnp.float32), atol=0.25, rtol=0.05
    )

    print("KERNEL_OK")
</pallas_src>

<mosaic_0001>
module attributes {stable_mosaic.version = 11 : i64} {
  func.func @_mlp_kernel_wresident(%arg0: i32, %arg1: memref<8x32xf32, #tpu.memory_space<vmem>>, %arg2: memref<32x128xbf16, #tpu.memory_space<vmem>>, %arg3: memref<1x128xf32, #tpu.memory_space<vmem>>, %arg4: memref<8x128xf32, #tpu.memory_space<vmem>>) attributes {dimension_semantics = [#tpu.dimension_semantics<parallel>], iteration_bounds = array<i64: 1>, scalar_prefetch = 0 : i64, scratch_operands = 0 : i64, tpu.core_type = #tpu.core_type<tc>, window_params = [{transform_indices = @transform_0, window_bounds = array<i64: 8, 32>}, {pipeline_mode = #tpu.pipeline_mode<synchronous>, transform_indices = @transform_1, window_bounds = array<i64: 32, 128>}, {pipeline_mode = #tpu.pipeline_mode<synchronous>, transform_indices = @transform_2, window_bounds = array<i64: 1, 128>}, {transform_indices = @transform_3, window_bounds = array<i64: 8, 128>}]} {
    %c0 = arith.constant 0 : index
    %c0_0 = arith.constant 0 : index
    %0 = vector.load %arg1[%c0, %c0_0] : memref<8x32xf32, #tpu.memory_space<vmem>>, vector<8x32xf32>
    %1 = arith.truncf %0 : vector<8x32xf32> to vector<8x32xbf16>
    %c0_1 = arith.constant 0 : index
    %c0_2 = arith.constant 0 : index
    %2 = vector.load %arg2[%c0_1, %c0_2] : memref<32x128xbf16, #tpu.memory_space<vmem>>, vector<32x128xbf16>
    %cst = arith.constant dense<0.000000e+00> : vector<8x128xf32>
    %3 = tpu.matmul %1, %2, %cst {dimension_numbers = #tpu.dot_dimension_numbers<[1], [0], [0], [1], [0, 0, 1, 1], [], []>} : vector<8x32xbf16>, vector<32x128xbf16>, vector<8x128xf32> -> vector<8x128xf32>
    %c0_3 = arith.constant 0 : index
    %c0_4 = arith.constant 0 : index
    %4 = vector.load %arg3[%c0_3, %c0_4] : memref<1x128xf32, #tpu.memory_space<vmem>>, vector<1x128xf32>
    %5 = vector.broadcast %4 : vector<1x128xf32> to vector<8x128xf32>
    %6 = arith.addf %3, %5 : vector<8x128xf32>
    %c0_5 = arith.constant 0 : index
    %c0_6 = arith.constant 0 : index
    %7 = vector.load %arg4[%c0_5, %c0_6] : memref<8x128xf32, #tpu.memory_space<vmem>>, vector<8x128xf32>
    tpu.vector_store %arg4[%c0_5, %c0_6], %6 {strides = array<i32>} : memref<8x128xf32, #tpu.memory_space<vmem>>, vector<8x128xf32>,
    return
  }
  func.func @transform_0(%arg0: i32) -> (i32, i32) {
    %c0_i32 = arith.constant 0 : i32
    %c0_i32_0 = arith.constant 0 : i32
    return %arg0, %c0_i32 : i32, i32
  }
  func.func @transform_1(%arg0: i32) -> (i32, i32) {
    %c0_i32 = arith.constant 0 : i32
    %c0_i32_0 = arith.constant 0 : i32
    %c0_i32_1 = arith.constant 0 : i32
    return %c0_i32, %c0_i32_0 : i32, i32
  }
  func.func @transform_2(%arg0: i32) -> (i32, i32) {
    %c0_i32 = arith.constant 0 : i32
    %c0_i32_0 = arith.constant 0 : i32
    %c0_i32_1 = arith.constant 0 : i32
    return %c0_i32, %c0_i32_0 : i32, i32
  }
  func.func @transform_3(%arg0: i32) -> (i32, i32) {
    %c0_i32 = arith.constant 0 : i32
    %c0_i32_0 = arith.constant 0 : i32
    return %arg0, %c0_i32 : i32, i32
  }
}

</mosaic_0001>

<bundles_post_ra>
// kernel: tpu_custom_call.1
= control target key start
LH: loop header
LB: loop body
LE: loop exit
PB: predicated region body
PF: predicated region fallthrough
CT: control target
= control target key end

     0   :  { %8 = vsyncpa [#allocation3], 0  ;;  %s257_s0 = inlined_call_operand.hbm [shape: f32[8,32], index: 0, kind: input, shape index: {}]   ;;  %s258_s1 = inlined_call_operand.hbm [shape: bf16[32,128], index: 1, kind: input, shape index: {}]   ;;  %s259_s2 = inlined_call_operand.vmem [shape: f32[1,128], index: 2, kind: input, shape index: {}]   ;;  %s260_s3 = inlined_call_operand.hbm [shape: f32[8,128], index: 3, kind: output, shape index: {}]  }
   0x1   :  { %9 = vsyncpa [#allocation6], 0 }
   0x2   :  { %10 = vsyncpa [#allocation4], 0  ;;  %s218_s12 = smov [#allocation2]   ;;  %s219_s14 = smov [#allocation5]  }
   0x3   :  { %s17_s13 = sshll.u32 %s218_s12, 4  ;;  %s26_s15 = sshll.u32 %s219_s14, 4  ;;  %s18_s13 = int_to_ptr.vmem [resolvable:$true] %s17_s13  ;;  %s27_s15 = int_to_ptr.vmem [resolvable:$true] %s26_s15 }
   0x4   :  { %s160_s16 = scalar_lea.vmem %s18_s13, 128  ;;  %p165_p1 = scmp.lt.s32.totalorder %s18_s13, %s18_s13 }
   0x5   :  { %p161_p0 = scmp.ne.s32.totalorder %s18_s13, %s160_s16  ;;  %p166_p2 = scmp.lt.s32.totalorder %s160_s16, %s160_s16 }
   0x7   :  { %p167_p3 = por %p166_p2, %p165_p1 }
   0x9   :  { %p168_p4 = pnand %p167_p3, %p161_p0 }
   0xb   :  { %171 = shalt.err (!%p168_p4)
}
   0xc   :  { %20 = dma.hbm_to_vmem [thread:$0]  %s257_s0, 128, %s18_s13, [#allocation3]  }
   0xd   :  { %s180_s19 = scalar_lea.vmem %s27_s15, 256  ;;  %p185_p6 = scmp.lt.s32.totalorder %s27_s15, %s27_s15 }
   0xe   :  { %p181_p5 = scmp.ne.s32.totalorder %s27_s15, %s180_s19  ;;  %p186_p7 = scmp.lt.s32.totalorder %s180_s19, %s180_s19 }
  0x10   :  { %p187_p8 = por %p186_p7, %p185_p6 }
  0x12   :  { %p188_p9 = pnand %p187_p8, %p181_p5 }
  0x14   :  { %191 = shalt.err (!%p188_p9)
}
  0x15   :  { %s220_s20 = smov 64   ;;  %s221_s21 = smov 4  }
  0x16   :  { %32 = dma.hbm_to_vmem [thread:$0]  %s258_s1, 256, %s27_s15, [#allocation6], %s220_s20, %s220_s20, %s221_s21  }
  0x17   :  { %212 = dma.done.wait [#allocation3], 128  }
  0x18   :  { %213 = vsyncadd [#allocation3], 4294967168 }
  0x19   :  { %214 = dma.done.wait [#allocation6], 256  }
  0x1a   :  { %215 = vsyncadd [#allocation6], 4294967040  ;;  %v222_v0 = vmov 0.0   ;;  %vm223_vm0 = vmmov 0   ;;  %v150_v1 = vld [vmem:[#allocation5 + $0x8] sm:$0xff]   ;;  %v151_v2 = vld [vmem:[#allocation5] sm:$0xff]  }
  0x1b   :  { %135 = vmatprep.subr.bf16.mxu0 %v222_v0  ;;  %139 = vmatprep.mubr.msk.bf16.mxu0 %vm223_vm0, %v222_v0  ;;  %v42_v3 = vld [vmem:[#allocation2] sm:$0xff]  ;;  %vm67_vm1 = vcmask 261120   ;;  %s224_s1 = smov [#allocation7]  }
  0x1c   :  { %136 = vmatpush3.bf16.msra.mxu0 %v150_v1  ;;  %v43_v4 = vpack.c.bf16 %v42_v3, %v42_v3  ;;  %v128_v5 = vld [vmem:[%s259_s2] ss:$0 sm:$0xff]  ;;  %s118_s25 = sshll.u32 %s224_s1, 4  ;;  %s119_s25 = int_to_ptr.vmem [resolvable:$true] %s118_s25 }
  0x1d   :  { %137 = vmatprep.subr.bf16.mxu0 %v222_v0  ;;  %s192_s26 = scalar_lea.vmem %s119_s25, 128  ;;  %p197_p11 = scmp.lt.s32.totalorder %s119_s25, %s119_s25 }
  0x1e   :  { %p193_p10 = scmp.ne.s32.totalorder %s119_s25, %s192_s26  ;;  %p198_p12 = scmp.lt.s32.totalorder %s192_s26, %s192_s26 }
  0x20   :  { %138 = vmatpush3.bf16.msra.mxu0 %v151_v2  ;;  %p199_p13 = por %p198_p12, %p197_p11 }
  0x22   :  { %p200_p0 = pnand %p199_p13, %p193_p10 }
  0x23   :  { %140 = vmatmul.mubr.msk.bf16.vlgmr.msra.gmra.mxu0 %vm67_vm1, %v43_v4 }
  0xe3   :  { %v105_v6 = vpop.f32.mrf.mxu0 }
  0xe4   :  { %v106_v7 = vadd.f32 %v128_v5, %v105_v6 }
  0xe5   :  { %v141_v8 = vpop.f32.mrf.mxu0 }
  0xe6   :  { %111 = vst [vmem:[#allocation7] sm:$0xff] %v106_v7 }
  0xe7   :  { %v108_v9 = vpop.f32.mrf.mxu0 }
  0xe8   :  { %203 = shalt.err (!%p200_p0)
}
  0xe9   :  { %121 = dma.vmem_to_hbm [thread:$0]  %s119_s25, 128, %s260_s3, [#allocation4]   ;;  %v142_v10 = vpop.f32.mrf.mxu0 }
  0xea   :  { %216 = dma.done.wait [#allocation4], 128  }
  0xeb   :  { %217 = vsyncadd [#allocation4], 4294967168 }
  0xec   :  { %125 = vsyncpa [#allocation3], 1 }
  0xed   :  { %126 = vsyncpa [#allocation6], 1 }
  0xee   :  { %127 = vsyncpa [#allocation4], 1 }

</bundles_post_ra>
